<compile_context>
chip_gen: v7x
topology: tpu7x:2x2x1
jax: 0.10.0
libtpu: 0.0.40
codegen_flags: <defaults>
</compile_context>

<pallas_src>
import functools

import jax
import jax.numpy as jnp
from jax.experimental import pallas as pl
from jax.experimental.pallas import tpu as pltpu

# args.M (margin) — the PyTorch module reads a global `args`; implemented here
# as a deterministic in-script constant.
MARGIN_M = 0.5

_SUB = 32                 # second-minor tile dim: sublane-dense for int8/bf16/f32
_COLS = 512               # lane-dense tile width (multiple of 128)
_SLAB = _SUB * _COLS      # elements per (SUB, COLS) slab


def _detect_num_cores():
    """TensorCores per chip (1 on v5e/v6e, 2 on v7x); safe fallback = 1."""
    try:
        dev = jax.devices()[0]
        n = getattr(dev, "num_cores", None)
        if n is not None:
            return max(1, min(2, int(n)))
        kind = str(getattr(dev, "device_kind", "")).lower()
        return 2 if ("v7" in kind or "7x" in kind) else 1
    except Exception:
        return 1


def _loss_jnp(ew, y, margin):
    """Pure-jnp path (reference / tail / small inputs) — matches the module."""
    ew = jnp.asarray(ew, jnp.float32)
    y = jnp.asarray(y, jnp.float32)
    one_minus = 1.0 - ew
    l_1 = 0.25 * one_minus * one_minus
    gated = jnp.where(ew < margin, 0.0, ew)
    l_0 = gated * gated
    return jnp.sum(y * l_1 + (1.0 - y) * l_0)


def _contrastive_loss_kernel(ew_ref, y_ref, out_ref, acc_ref, *,
                             margin, blocks_per_step):
    """Grid = (num_cores [parallel], chunks [arbitrary/reduction])."""
    step = pl.program_id(1)

    @pl.when(step == 0)
    def _():
        acc_ref[...] = jnp.zeros_like(acc_ref)

    def slab(j, carry):
        # One (SUB, COLS) slab at a time keeps live vregs bounded (no spill of
        # large fused temporaries); narrow dtypes are upcast in-kernel.
        ew = ew_ref[j].astype(jnp.float32)        # (SUB, COLS)
        yv = y_ref[j].astype(jnp.float32)         # (SUB, COLS)
        one_minus = 1.0 - ew
        l_1 = 0.25 * one_minus * one_minus
        gated = jnp.where(ew < margin, 0.0, ew)
        l_0 = gated * gated
        acc_ref[...] += yv * l_1 + (1.0 - yv) * l_0
        return carry

    if blocks_per_step <= 8:      # short fixed loop -> static unroll
        for j in range(blocks_per_step):
            slab(j, 0)
    else:
        jax.lax.fori_loop(0, blocks_per_step, slab, 0)

    @pl.when(step == pl.num_programs(1) - 1)
    def _():
        out_ref[...] = acc_ref[...]


def contrastive_loss(ew, y, margin=MARGIN_M, *,
                     target_block_bytes=4 << 20,
                     num_cores=None,
                     min_kernel_elems=65536):
    """Pallas-backed ContrastiveLoss.forward(Ew, y) -> scalar f32 loss."""
    ew = jnp.asarray(ew)
    y = jnp.asarray(y)
    n = int(ew.size)
    assert int(y.size) == n, "Ew and y must have the same number of elements"

    ew_flat = ew.reshape(-1)
    y_flat = y.reshape(-1)

    if num_cores is None:
        num_cores = _detect_num_cores()
    num_cores = max(1, int(num_cores))

    # --- byte-targeted tiling (~4 MiB / input / step by default) -------------
    target_block_bytes = int(min(max(int(target_block_bytes), 16 << 10), 8 << 20))
    max_itemsize = max(ew_flat.dtype.itemsize, y_flat.dtype.itemsize)
    blocks_per_step = max(1, target_block_bytes // (_SLAB * max_itemsize))
    elems_per_step = blocks_per_step * _SLAB
    elems_per_col = num_cores * elems_per_step
    chunks = n // elems_per_col

    # Small inputs: launch + pipeline fixed cost dwarfs the arithmetic.
    if n < min_kernel_elems or chunks == 0:
        return _loss_jnp(ew_flat, y_flat, margin)

    # --- exact-multiple prefix: reshape is a free view, no padding copy ------
    n_main = chunks * elems_per_col
    rows = n_main // _SLAB            # = num_cores * chunks * blocks_per_step
    ew_main = (ew_flat if n_main == n else ew_flat[:n_main]).reshape(rows, _SUB, _COLS)
    y_main = (y_flat if n_main == n else y_flat[:n_main]).reshape(rows, _SUB, _COLS)

    kernel = functools.partial(_contrastive_loss_kernel,
                               margin=float(margin),
                               blocks_per_step=blocks_per_step)

    ew_block_bytes = elems_per_step * ew_flat.dtype.itemsize
    y_block_bytes = elems_per_step * y_flat.dtype.itemsize
    # 2 double-buffers per input + accumulator/output + slack; must exceed the
    # 16 MiB scoped default on v5e, stays well under v7x's 64 MiB physical.
    vmem_limit = int(max(32 << 20, 2 * (ew_block_bytes + y_block_bytes) + (2 << 20)))

    cost = pl.CostEstimate(
        flops=8 * n_main,
        transcendentals=0,
        bytes_accessed=n_main * (ew_flat.dtype.itemsize + y_flat.dtype.itemsize)
        + num_cores * _SLAB * 4,
    )

    partials = pl.pallas_call(
        kernel,
        out_shape=jax.ShapeDtypeStruct((num_cores, _SUB, _COLS), jnp.float32),
        grid_spec=pltpu.PrefetchScalarGridSpec(
            num_scalar_prefetch=0,
            grid=(num_cores, chunks),
            in_specs=[
                pl.BlockSpec((blocks_per_step, _SUB, _COLS),
                             lambda c, i: (c * chunks + i, 0, 0)),
                pl.BlockSpec((blocks_per_step, _SUB, _COLS),
                             lambda c, i: (c * chunks + i, 0, 0)),
            ],
            out_specs=pl.BlockSpec((None, _SUB, _COLS), lambda c, i: (c, 0, 0)),
            scratch_shapes=[pltpu.VMEM((_SUB, _COLS), jnp.float32)],
        ),
        compiler_params=pltpu.CompilerParams(
            dimension_semantics=("parallel", "arbitrary"),
            vmem_limit_bytes=vmem_limit,
        ),
        cost_estimate=cost,
    )(ew_main, y_main)

    total = jnp.sum(partials)

    # --- tail (< one grid column of elements) handled by plain XLA -----------
    if n_main < n:
        total = total + _loss_jnp(ew_flat[n_main:], y_flat[n_main:], margin)

    return total


if __name__ == "__main__":
    key = jax.random.PRNGKey(0)
    k_ew, k_y = jax.random.split(key)

    # Moderate 1-D batch so the kernel path (not just the tiny-input fast
    # path) runs, with a non-multiple tail to exercise the tail handling.
    # Small target_block_bytes keeps the test input small while still
    # producing a multi-step grid.
    batch = 70_000
    ew = jax.random.uniform(k_ew, (batch,), jnp.float32, minval=-1.0, maxval=1.0)
    y = jax.random.bernoulli(k_y, 0.5, (batch,)).astype(jnp.float32)

    loss = jax.block_until_ready(contrastive_loss(ew, y, target_block_bytes=64 << 10))
    ref = jax.block_until_ready(_loss_jnp(ew, y, MARGIN_M))
    assert jnp.allclose(loss, ref, rtol=1e-4, atol=1e-2), (loss, ref)

    # Narrow-dtype path (bf16 scores, int8 labels) — upcast happens in-kernel.
    ew_bf16 = ew.astype(jnp.bfloat16)
    y_i8 = y.astype(jnp.int8)
    loss_n = jax.block_until_ready(
        contrastive_loss(ew_bf16, y_i8, target_block_bytes=64 << 10))
    ref_n = jax.block_until_ready(
        _loss_jnp(ew_bf16.astype(jnp.float32), y_i8, MARGIN_M))
    assert jnp.allclose(loss_n, ref_n, rtol=1e-4, atol=1e-1), (loss_n, ref_n)

    # Tiny input exercises the small-input fast path.
    ew_s, y_s = ew[:8], y[:8]
    loss_s = jax.block_until_ready(contrastive_loss(ew_s, y_s))
    ref_s = jax.block_until_ready(_loss_jnp(ew_s, y_s, MARGIN_M))
    assert jnp.allclose(loss_s, ref_s, rtol=1e-6, atol=1e-6), (loss_s, ref_s)

    print("KERNEL_OK")
</pallas_src>

<mosaic_0001>
module attributes {stable_mosaic.version = 11 : i64} {
  func.func @_contrastive_loss_kernel(%arg0: i32, %arg1: i32, %arg2: memref<1x32x512xf32, #tpu.memory_space<vmem>>, %arg3: memref<1x32x512xf32, #tpu.memory_space<vmem>>, %arg4: memref<1x32x512xf32, #tpu.memory_space<vmem>>, %arg5: memref<32x512xf32, #tpu.memory_space<vmem>>) attributes {dimension_semantics = [#tpu.dimension_semantics<parallel>, #tpu.dimension_semantics<arbitrary>], iteration_bounds = array<i64: 1, 4>, scalar_prefetch = 0 : i64, scratch_operands = 1 : i64, tpu.core_type = #tpu.core_type<tc>, window_params = [{transform_indices = @transform_0, window_bounds = array<i64: 1, 32, 512>}, {transform_indices = @transform_1, window_bounds = array<i64: 1, 32, 512>}, {transform_indices = @transform_2, window_bounds = array<i64: 1, 32, 512>}]} {
    %c0_i32 = arith.constant 0 : i32
    %0 = arith.cmpi eq, %arg1, %c0_i32 : i32
    %1 = arith.extui %0 : i1 to i32
    %c0_i32_0 = arith.constant 0 : i32
    %2 = arith.cmpi ne, %1, %c0_i32_0 : i32
    scf.if %2 {
      %cst_15 = arith.constant 0.000000e+00 : f32
      %28 = vector.broadcast %cst_15 : f32 to vector<32x512xf32>
      %c0_16 = arith.constant 0 : index
      %c0_17 = arith.constant 0 : index
      %29 = vector.load %arg5[%c0_16, %c0_17] : memref<32x512xf32, #tpu.memory_space<vmem>>, vector<32x512xf32>
      tpu.vector_store %arg5[%c0_16, %c0_17], %28 {strides = array<i32>} : memref<32x512xf32, #tpu.memory_space<vmem>>, vector<32x512xf32>,
    } else {
    }
    %c0 = arith.constant 0 : index
    %c0_1 = arith.constant 0 : index
    %c0_2 = arith.constant 0 : index
    %3 = vector.load %arg2[%c0, %c0_1, %c0_2] : memref<1x32x512xf32, #tpu.memory_space<vmem>>, vector<1x32x512xf32>
    %4 = vector.shape_cast %3 : vector<1x32x512xf32> to vector<32x512xf32>
    %c0_3 = arith.constant 0 : index
    %c0_4 = arith.constant 0 : index
    %c0_5 = arith.constant 0 : index
    %5 = vector.load %arg3[%c0_3, %c0_4, %c0_5] : memref<1x32x512xf32, #tpu.memory_space<vmem>>, vector<1x32x512xf32>
    %6 = vector.shape_cast %5 : vector<1x32x512xf32> to vector<32x512xf32>
    %cst = arith.constant 1.000000e+00 : f32
    %7 = vector.broadcast %cst : f32 to vector<32x512xf32>
    %8 = arith.subf %7, %4 : vector<32x512xf32>
    %cst_6 = arith.constant 2.500000e-01 : f32
    %9 = vector.broadcast %cst_6 : f32 to vector<32x512xf32>
    %10 = arith.mulf %9, %8 : vector<32x512xf32>
    %11 = arith.mulf %10, %8 : vector<32x512xf32>
    %cst_7 = arith.constant 5.000000e-01 : f32
    %12 = vector.broadcast %cst_7 : f32 to vector<32x512xf32>
    %13 = arith.cmpf olt, %4, %12 : vector<32x512xf32>
    %cst_8 = arith.constant 0.000000e+00 : f32
    %14 = vector.broadcast %cst_8 : f32 to vector<32x512xf32>
    %15 = arith.select %13, %14, %4 : vector<32x512xi1>, vector<32x512xf32>
    %16 = arith.mulf %15, %15 : vector<32x512xf32>
    %c0_9 = arith.constant 0 : index
    %c0_10 = arith.constant 0 : index
    %17 = vector.load %arg5[%c0_9, %c0_10] : memref<32x512xf32, #tpu.memory_space<vmem>>, vector<32x512xf32>
    %18 = arith.mulf %6, %11 : vector<32x512xf32>
    %cst_11 = arith.constant 1.000000e+00 : f32
    %19 = vector.broadcast %cst_11 : f32 to vector<32x512xf32>
    %20 = arith.subf %19, %6 : vector<32x512xf32>
    %21 = arith.mulf %20, %16 : vector<32x512xf32>
    %22 = arith.addf %18, %21 : vector<32x512xf32>
    %23 = arith.addf %17, %22 : vector<32x512xf32>
    %c0_12 = arith.constant 0 : index
    %c0_13 = arith.constant 0 : index
    %24 = vector.load %arg5[%c0_12, %c0_13] : memref<32x512xf32, #tpu.memory_space<vmem>>, vector<32x512xf32>
    tpu.vector_store %arg5[%c0_12, %c0_13], %23 {strides = array<i32>} : memref<32x512xf32, #tpu.memory_space<vmem>>, vector<32x512xf32>,
    %c3_i32 = arith.constant 3 : i32
    %25 = arith.cmpi eq, %arg1, %c3_i32 : i32
    %26 = arith.extui %25 : i1 to i32
    %c0_i32_14 = arith.constant 0 : i32
    %27 = arith.cmpi ne, %26, %c0_i32_14 : i32
    scf.if %27 {
      %c0_15 = arith.constant 0 : index
      %c0_16 = arith.constant 0 : index
      %28 = vector.load %arg5[%c0_15, %c0_16] : memref<32x512xf32, #tpu.memory_space<vmem>>, vector<32x512xf32>
      %c0_17 = arith.constant 0 : index
      %c0_18 = arith.constant 0 : index
      %c0_19 = arith.constant 0 : index
      %29 = vector.load %arg4[%c0_17, %c0_18, %c0_19] : memref<1x32x512xf32, #tpu.memory_space<vmem>>, vector<1x32x512xf32>
      %30 = vector.shape_cast %29 : vector<1x32x512xf32> to vector<32x512xf32>
      %31 = vector.shape_cast %28 : vector<32x512xf32> to vector<1x32x512xf32>
      tpu.vector_store %arg4[%c0_17, %c0_18, %c0_19], %31 {strides = array<i32>} : memref<1x32x512xf32, #tpu.memory_space<vmem>>, vector<1x32x512xf32>,
    } else {
    }
    return
  }
  func.func @transform_0(%arg0: i32, %arg1: i32) -> (i32, i32, i32) {
    %c4_i32 = arith.constant 4 : i32
    %0 = arith.muli %arg0, %c4_i32 : i32
    %1 = arith.addi %0, %arg1 : i32
    %c0_i32 = arith.constant 0 : i32
    %c0_i32_0 = arith.constant 0 : i32
    %c0_i32_1 = arith.constant 0 : i32
    return %1, %c0_i32, %c0_i32_0 : i32, i32, i32
  }
  func.func @transform_1(%arg0: i32, %arg1: i32) -> (i32, i32, i32) {
    %c4_i32 = arith.constant 4 : i32
    %0 = arith.muli %arg0, %c4_i32 : i32
    %1 = arith.addi %0, %arg1 : i32
    %c0_i32 = arith.constant 0 : i32
    %c0_i32_0 = arith.constant 0 : i32
    %c0_i32_1 = arith.constant 0 : i32
    return %1, %c0_i32, %c0_i32_0 : i32, i32, i32
  }
  func.func @transform_2(%arg0: i32, %arg1: i32) -> (i32, i32, i32) {
    %c0_i32 = arith.constant 0 : i32
    %c0_i32_0 = arith.constant 0 : i32
    %c0_i32_1 = arith.constant 0 : i32
    return %arg0, %c0_i32, %c0_i32_0 : i32, i32, i32
  }
}

</mosaic_0001>

<bundles_post_ra>
// kernel: tpu_custom_call.1
= control target key start
LH: loop header
LB: loop body
LE: loop exit
PB: predicated region body
PF: predicated region fallthrough
CT: control target
= control target key end

     0   :  { %7 = vsyncpa [#allocation4], 0  ;;  %s1127_s0 = inlined_call_operand.hbm [shape: f32[4,32,512], index: 0, kind: input, shape index: {}]   ;;  %s1128_s1 = inlined_call_operand.hbm [shape: f32[4,32,512], index: 1, kind: input, shape index: {}]   ;;  %s1129_s2 = inlined_call_operand.hbm [shape: f32[1,32,512], index: 2, kind: output, shape index: {}]  }
   0x1   :  { %9 = vsyncpa [#allocation4 + $0x1], 0 }
   0x2   :  { %10 = vsyncpa [#allocation7], 0 }
   0x3   :  { %12 = vsyncpa [#allocation7 + $0x1], 0 }
   0x4   :  { %13 = vsyncpa [#allocation5], 0  ;;  %s880_s9 = smov 0   ;;  %s882_s10 = smov 0  }
   0x5   :  { %s884_s11 = smov 0   ;;  %s886_s12 = smov 0  }
   0x6   :  { %s888_s13 = smov 0   ;;  %s890_s14 = smov 0  }
   0x7 LB: > { %s619_s15 = sadd.s32 4294967295, %s855_s14   ;;  %s28_s16 = sadd.s32 1, %s851_s13  ;;  %s855_s14 = sphi %s890_s14, %s19_s14   ;;  %s851_s13 = sphi %s888_s13, %s1141_s13   ;;  %s847_s12 = sphi %s886_s12, %s1140_s12   ;;  %s843_s11 = sphi %s884_s11, %s1139_s11   ;;  %s839_s10 = sphi %s882_s10, %s1138_s10   ;;  %s835_s9 = sphi %s880_s9, %s1137_s9  }
   0x8   : > { %p29_p0 = scmp.ge.s32.totalorder %s28_s16, 4  ;;  %s42_s17 = sadd.s32 1, %s843_s11 }
   0x9   : > { %p49_p1 = scmp.ne.s32.totalorder %s843_s11, %s839_s10  ;;  %p50_p2 = scmp.eq.s32.totalorder %s855_s14, 0 }
   0xa   : > { %s1143_s16 = smov (%p29_p0, %s28_s16), 0  ;;  %p55_p4 = scmp.ne.s32.totalorder %s839_s10, %s835_s9 }
   0xb   : > { %p916_p3 = por %p50_p2, %p49_p1  ;;  %s39_s19 = ssub.s32 %s851_s13, %s1143_s16 }
   0xc   : > { %p56_p5 = scmp.eq.s32.totalorder %s619_s15, 0  ;;  %p40_p6 = scmp.eq.s32.totalorder %s39_s19, 0 }
   0xd   : > { %p654_p8 = scmp.lt.s32.totalorder %s855_s14, 4  ;;  %s934_s22 = sand.u32 1, %s843_s11  }
   0xe   : > { %p925_p7 = por %p56_p5, %p55_p4  ;;  %s637_s23 = sshll.u32 %s851_s13, 11 }
   0xf   : > { %s931_s21 = scalar_select %p40_p6, %s843_s11, %s42_s17  }
  0x10   : > { %s1132_s20 = scalar_select %p925_p7, 1, 0 }
  0x11   : > { %s622_s24 = sshll.u32 %s934_s22, 7  ;;  %s943_s27 = scalar_lea.hbm %s1127_s0, %s637_s23 }
  0x12   : > { %s139_s28 = scalar_lea.vmem [#allocation3], %s622_s24  ;;  %p949_p9 = pnand %p654_p8, %p916_p3 }
  0x13   : > { %s148_s29 = sshll.u32 %s139_s28, 4  ;;  %s136_s3 = scalar_lea.sflag [#allocation4], %s934_s22  ;;  %s953_s29 = int_to_ptr.vmem [resolvable:$true] %s148_s29 }
  0x14   : > { %s711_s4 = scalar_lea.hbm %s943_s27, 2048  ;;  %p713_p11 = pneg %p949_p9 }
  0x15   : > { %p712_p10 = scmp.ne.s32.totalorder %s943_s27, %s711_s4  ;;  %s716_s7 = scalar_lea.hbm %s1127_s0, 8192 }
  0x16   : > { %p717_p0 = scmp.lt.u32.totalorder %s943_s27, %s1127_s0  ;;  %p718_p1 = scmp.lt.u32.totalorder %s716_s7, %s711_s4 }
  0x17   : > { %p714_p12 = pnand %p713_p11, %p712_p10  ;;  %p720_p3 = scmp.lt.u32.totalorder %s711_s4, %s943_s27 }
  0x18   : > { %p719_p2 = por %p718_p1, %p717_p0 }
  0x19   : > { %p715_p13 = pneg %p714_p12 }
  0x1a   : > { %p721_p4 = por %p720_p3, %p719_p2 }
  0x1c   : > { %p722_p5 = pnand %p721_p4, %p715_p13 }
  0x1e   : > { %725 = shalt.err (!%p722_p5)
}
  0x1f   : > { %s726_s17 = scalar_lea.vmem %s953_s29, 2048  ;;  %s857_s18 = smov [#allocation3]  }
  0x20   : > { %p727_p6 = scmp.ne.s32.totalorder %s953_s29, %s726_s17  ;;  %s731_s19 = sshll.u32 %s857_s18, 4  ;;  %s732_s19 = int_to_ptr.vmem [resolvable:$false] %s731_s19 }
  0x21   : > { %s733_s25 = scalar_lea.vmem %s732_s19, 4096  ;;  %p734_p12 = scmp.lt.s32.totalorder %s953_s29, %s732_s19 }
  0x22   : > { %p729_p8 = pnand %p727_p6, %p713_p11  ;;  %p735_p0 = scmp.lt.s32.totalorder %s733_s25, %s726_s17 }
  0x24   : > { %p730_p10 = pneg %p729_p8  ;;  %p736_p1 = por %p735_p0, %p734_p12 }
  0x26   : > { %p737_p2 = pnand %p736_p1, %p730_p10 }
  0x28   : > { %740 = shalt.err (!%p737_p2)
}
  0x29   : > { %s858_s26 = smov 512   ;;  %s859_s28 = smov 32  }
  0x2a   : > { %650 = dma.hbm_to_vmem [thread:$0]  (!%p949_p9), %s943_s27, 2048, %s953_s29, %s136_s3, %s858_s26, %s858_s26, %s859_s28  }
  0x2b   : > { %p628_p13 = scmp.ge.s32.totalorder %s855_s14, 1  ;;  %p179_p3 = scmp.lt.s32.totalorder %s855_s14, 5 }
  0x2c   : > { %s997_s7 = scalar_lea.hbm %s1128_s1, %s637_s23  ;;  %s162_s8 = scalar_lea.vmem [#allocation6], %s622_s24 }
  0x2d   : > { %p988_p4 = pnand %p628_p13, %p179_p3  ;;  %s171_s9 = sshll.u32 %s162_s8, 4  ;;  %s1001_s9 = int_to_ptr.vmem [resolvable:$true] %s171_s9 }
  0x2e   : > { %s159_s27 = scalar_lea.sflag [#allocation7], %s934_s22  ;;  %s741_s29 = scalar_lea.hbm %s997_s7, 2048 }
  0x2f   : > { %p742_p5 = scmp.ne.s32.totalorder %s997_s7, %s741_s29  ;;  %s746_s23 = scalar_lea.hbm %s1128_s1, 8192 }
  0x30   : > { %p747_p10 = scmp.lt.u32.totalorder %s997_s7, %s1128_s1  ;;  %p748_p12 = scmp.lt.u32.totalorder %s746_s23, %s741_s29 }
  0x31   : > { %p744_p6 = pnand %p742_p5, %p713_p11  ;;  %p750_p1 = scmp.lt.u32.totalorder %s741_s29, %s997_s7 }
  0x32   : > { %p749_p0 = por %p748_p12, %p747_p10 }
  0x33   : > { %p745_p8 = pneg %p744_p6 }
  0x34   : > { %p751_p2 = por %p750_p1, %p749_p0 }
  0x36   : > { %p752_p13 = pnand %p751_p2, %p745_p8 }
  0x38   : > { %755 = shalt.err (!%p752_p13)
}
  0x39   : > { %s756_s24 = scalar_lea.vmem %s1001_s9, 2048  ;;  %s860_s25 = smov [#allocation6]  }
  0x3a   : > { %p757_p3 = scmp.ne.s32.totalorder %s1001_s9, %s756_s24  ;;  %s761_s5 = sshll.u32 %s860_s25, 4  ;;  %s762_s5 = int_to_ptr.vmem [resolvable:$false] %s761_s5 }
  0x3b   : > { %s763_s6 = scalar_lea.vmem %s762_s5, 4096  ;;  %p764_p7 = scmp.lt.s32.totalorder %s1001_s9, %s762_s5 }
  0x3c   : > { %p759_p5 = pnand %p757_p3, %p713_p11  ;;  %p765_p10 = scmp.lt.s32.totalorder %s763_s6, %s756_s24 }
  0x3e   : > { %p760_p6 = pneg %p759_p5  ;;  %p766_p12 = por %p765_p10, %p764_p7 }
  0x40   : > { %p767_p0 = pnand %p766_p12, %p760_p6 }
  0x42   : > { %770 = shalt.err (!%p767_p0)
}
  0x43   : > { %653 = dma.hbm_to_vmem [thread:$0]  (!%p949_p9), %s997_s7, 2048, %s1001_s9, %s159_s27, %s858_s26, %s858_s26, %s859_s28  }
  0x44   : > { %183 = sbr.rel (%p988_p4) target bundleno = 175 (0xaf), region = 28  ;;  %s185_s8 = sand.u32 (!%p988_p4), 1, %s839_s10  }
  0x45   : > { %s629_s29 = sshll.u32 (!%p988_p4), %s185_s8, 7  ;;  %s186_s3 = scalar_lea.sflag (!%p988_p4), [#allocation4], %s185_s8 }
  0x46   : > { %s1035_s17 = scalar_lea.vmem (!%p988_p4), [#allocation3], %s629_s29  ;;  %p1135_p7 = scmp.ne.s32.totalorder (!%p988_p4), %s1132_s20, 0 }
  0x4b   : > { %822 = dma.done.wait (%p1135_p7), %s186_s3, 2048  }
  0x4c   : > { %824 = vsyncadd (%p1135_p7), %s186_s3, 4294965248  ;;  %s195_s22 = scalar_lea.sflag [#allocation7], %s185_s8  ;;  %s1041_s30 = scalar_lea.vmem [#allocation6], %s629_s29 }
  0x4d   : > { %826 = dma.done.wait (%p1135_p7), %s195_s22, 2048  }
  0x4e   : > { %828 = vsyncadd (%p1135_p7), %s195_s22, 4294965248  ;;  %p631_p9 = scmp.ne.s32.totalorder %s847_s12, 0 }
  0x4f   : > { %v861_v0 = vmov (!%p631_p9), 0.0  }
  0x50   : > { %226 = sbr.rel (%p631_p9) target bundleno = 88 (0x58), region = 40  ;;  %227 = vst [vmem:[#allocation2] sm:$0xff] (!%p631_p9), %v861_v0  ;;  %228 = vst [vmem:[#allocation2 + $0x8] sm:$0xff] (!%p631_p9), %v861_v0 }
  0x51   : > { %229 = vst [vmem:[#allocation2 + $0x10] sm:$0xff] (!%p631_p9), %v861_v0  ;;  %230 = vst [vmem:[#allocation2 + $0x18] sm:$0xff] (!%p631_p9), %v861_v0 }
  0x52   : > { %231 = vst [vmem:[#allocation2 + $0x20] sm:$0xff] (!%p631_p9), %v861_v0  ;;  %232 = vst [vmem:[#allocation2 + $0x28] sm:$0xff] (!%p631_p9), %v861_v0 }
  0x53   : > { %233 = vst [vmem:[#allocation2 + $0x30] sm:$0xff] (!%p631_p9), %v861_v0  ;;  %234 = vst [vmem:[#allocation2 + $0x38] sm:$0xff] (!%p631_p9), %v861_v0 }
  0x54   : > { %235 = vst [vmem:[#allocation2 + $0x40] sm:$0xff] (!%p631_p9), %v861_v0  ;;  %236 = vst [vmem:[#allocation2 + $0x48] sm:$0xff] (!%p631_p9), %v861_v0 }
  0x55   : > { %237 = vst [vmem:[#allocation2 + $0x50] sm:$0xff] (!%p631_p9), %v861_v0  ;;  %238 = vst [vmem:[#allocation2 + $0x58] sm:$0xff] (!%p631_p9), %v861_v0 }
  0x56   : > { %239 = vst [vmem:[#allocation2 + $0x60] sm:$0xff] (!%p631_p9), %v861_v0  ;;  %240 = vst [vmem:[#allocation2 + $0x68] sm:$0xff] (!%p631_p9), %v861_v0 }
  0x57   : > { %241 = vst [vmem:[#allocation2 + $0x70] sm:$0xff] %v861_v0  ;;  %242 = vst [vmem:[#allocation2 + $0x78] sm:$0xff] %v861_v0 }
  0x58 PF: > { %v243_v1 = vld [vmem:[%s1035_s17] sm:$0xff]  ;;  %v244_v5 = vld [vmem:[%s1035_s17 + $0x8] sm:$0xff]  ;;  %v245_v10 = vld [vmem:[%s1035_s17 + $0x10] sm:$0xff]  ;;  %p632_p11 = scmp.ne.s32.totalorder %s847_s12, 3 }
  0x59   : > { %v259_v2 = vld [vmem:[%s1041_s30] sm:$0xff]  ;;  %v275_v3 = vsub.f32 1.0, %v243_v1  ;;  %vm323_vm0 = vcmp.lt.f32.partialorder %v243_v1, 0.5  ;;  %v260_v6 = vld [vmem:[%s1041_s30 + $0x8] sm:$0xff]  ;;  %v276_v8 = vsub.f32 1.0, %v244_v5  ;;  %vm324_vm1 = vcmp.lt.f32.partialorder %v244_v5, 0.5 }
  0x5a   : > { %v403_v4 = vsub.f32 1.0, %v259_v2  ;;  %v339_v7 = vsel %vm323_vm0, 0.0, %v243_v1  ;;  %v404_v9 = vsub.f32 1.0, %v260_v6  ;;  %v261_v11 = vld [vmem:[%s1041_s30 + $0x10] sm:$0xff]  ;;  %v340_v14 = vsel %vm324_vm1, 0.0, %v244_v5  ;;  %v246_v16 = vld [vmem:[%s1035_s17 + $0x18] sm:$0xff] }
  0x5b   : > { %v291_v12 = vmul.f32 0.25, %v275_v3  ;;  %v355_v13 = vmul.f32 %v339_v7, %v339_v7  ;;  %v277_v15 = vsub.f32 1.0, %v245_v10  ;;  %v292_v17 = vmul.f32 0.25, %v276_v8  ;;  %v262_v20 = vld [vmem:[%s1041_s30 + $0x18] sm:$0xff]  ;;  %v247_v29 = vld [vmem:[%s1035_s17 + $0x20] sm:$0xff]  ;;  %v372_v40 = vld [vmem:[#allocation2 + $0x8] sm:$0xff] }
  0x5c   : > { %v356_v18 = vmul.f32 %v340_v14, %v340_v14  ;;  %vm325_vm2 = vcmp.lt.f32.partialorder %v245_v10, 0.5  ;;  %v405_v19 = vsub.f32 1.0, %v261_v11  ;;  %v278_v28 = vsub.f32 1.0, %v246_v16  ;;  %v263_v33 = vld [vmem:[%s1041_s30 + $0x20] sm:$0xff]  ;;  %v248_v44 = vld [vmem:[%s1035_s17 + $0x28] sm:$0xff]  ;;  %v373_v46 = vld [vmem:[#allocation2 + $0x10] sm:$0xff] }
  0x5d   : > { %v307_v21 = vmul.f32 %v291_v12, %v275_v3  ;;  %v419_v22 = vmul.f32 %v403_v4, %v355_v13  ;;  %v293_v23 = vmul.f32 0.25, %v277_v15  ;;  %v341_v24 = vsel %vm325_vm2, 0.0, %v245_v10  ;;  %v371_v34 = vld [vmem:[#allocation2] sm:$0xff]  ;;  %v264_v53 = vld [vmem:[%s1041_s30 + $0x28] sm:$0xff]  ;;  %v249_v58 = vld [vmem:[%s1035_s17 + $0x30] sm:$0xff] }
  0x5e   : > { %v308_v25 = vmul.f32 %v292_v17, %v276_v8  ;;  %v420_v26 = vmul.f32 %v404_v9, %v356_v18  ;;  %v357_v27 = vmul.f32 %v341_v24, %v341_v24  ;;  %vm326_vm3 = vcmp.lt.f32.partialorder %v246_v16, 0.5  ;;  %v374_v60 = vld [vmem:[#allocation2 + $0x18] sm:$0xff]  ;;  %v265_v63 = vld [vmem:[%s1041_s30 + $0x30] sm:$0xff]  ;;  %v375_v10 = vld [vmem:[#allocation2 + $0x20] sm:$0xff] }
  0x5f   : > { %v387_v30 = vmul.f32 %v307_v21, %v259_v2  ;;  %v309_v31 = vmul.f32 %v293_v23, %v277_v15  ;;  %v406_v32 = vsub.f32 1.0, %v262_v20  ;;  %v294_v37 = vmul.f32 0.25, %v278_v28  ;;  %v250_v8 = vld [vmem:[%s1035_s17 + $0x38] sm:$0xff]  ;;  %v251_v21 = vld [vmem:[%s1035_s17 + $0x40] sm:$0xff]  ;;  %v376_v24 = vld [vmem:[#allocation2 + $0x28] sm:$0xff] }
  0x60   : > { %v388_v35 = vmul.f32 %v308_v25, %v260_v6  ;;  %v421_v36 = vmul.f32 %v405_v19, %v357_v27  ;;  %v342_v38 = vsel %vm326_vm3, 0.0, %v246_v16  ;;  %v279_v43 = vsub.f32 1.0, %v247_v29  ;;  %v266_v13 = vld [vmem:[%s1041_s30 + $0x38] sm:$0xff] }
  0x61   : > { %v435_v39 = vadd.f32 %v419_v22, %v387_v30  ;;  %v389_v41 = vmul.f32 %v309_v31, %v261_v11  ;;  %v358_v42 = vmul.f32 %v342_v38, %v342_v38  ;;  %v310_v47 = vmul.f32 %v294_v37, %v278_v28  ;;  %v267_v22 = vld [vmem:[%s1041_s30 + $0x40] sm:$0xff]  ;;  %v253_v37 = vld [vmem:[%s1035_s17 + $0x50] sm:$0xff] }
  0x62   : > { %v436_v45 = vadd.f32 %v420_v26, %v388_v35  ;;  %vm327_vm4 = vcmp.lt.f32.partialorder %v247_v29, 0.5  ;;  %v407_v48 = vsub.f32 1.0, %v263_v33  ;;  %v295_v52 = vmul.f32 0.25, %v279_v43 }
  0x63   : > { %v451_v49 = vadd.f32 %v435_v39, %v371_v34  ;;  %v437_v50 = vadd.f32 %v421_v36, %v389_v41  ;;  %v422_v51 = vmul.f32 %v406_v32, %v358_v42  ;;  %v390_v55 = vmul.f32 %v310_v47, %v262_v20  ;;  %v252_v32 = vld [vmem:[%s1035_s17 + $0x48] sm:$0xff]  ;;  %v377_v39 = vld [vmem:[#allocation2 + $0x30] sm:$0xff] }
  0x64   : > { %v452_v54 = vadd.f32 %v436_v45, %v372_v40  ;;  %v343_v56 = vsel %vm327_vm4, 0.0, %v247_v29  ;;  %v280_v57 = vsub.f32 1.0, %v248_v44  ;;  %v311_v61 = vmul.f32 %v295_v52, %v279_v43  ;;  %v268_v36 = vld [vmem:[%s1041_s30 + $0x48] sm:$0xff] }
  0x65   : > { %467 = vst [vmem:[#allocation2] sm:$0xff] %v451_v49  ;;  %v453_v59 = vadd.f32 %v437_v50, %v373_v46  ;;  %v359_v62 = vmul.f32 %v343_v56, %v343_v56  ;;  %vm328_vm5 = vcmp.lt.f32.partialorder %v248_v44, 0.5  ;;  %v438_v0 = vadd.f32 %v422_v51, %v390_v55  ;;  %v378_v51 = vld [vmem:[#allocation2 + $0x38] sm:$0xff]  ;;  %v269_v55 = vld [vmem:[%s1041_s30 + $0x50] sm:$0xff] }
  0x66   : > { %468 = vst [vmem:[#allocation2 + $0x8] sm:$0xff] %v452_v54  ;;  %v296_v1 = vmul.f32 0.25, %v280_v57  ;;  %v344_v2 = vsel %vm328_vm5, 0.0, %v248_v44  ;;  %v408_v3 = vsub.f32 1.0, %v264_v53  ;;  %v391_v4 = vmul.f32 %v311_v61, %v263_v33 }
  0x67   : > { %469 = vst [vmem:[#allocation2 + $0x10] sm:$0xff] %v453_v59  ;;  %v423_v5 = vmul.f32 %v407_v48, %v359_v62  ;;  %v360_v6 = vmul.f32 %v344_v2, %v344_v2  ;;  %v281_v7 = vsub.f32 1.0, %v249_v58  ;;  %v454_v9 = vadd.f32 %v438_v0, %v374_v60  ;;  %v254_v59 = vld [vmem:[%s1035_s17 + $0x58] sm:$0xff]  ;;  %v379_v2 = vld [vmem:[#allocation2 + $0x40] sm:$0xff] }
  0x68   : > { %v312_v11 = vmul.f32 %v296_v1, %v280_v57  ;;  %vm329_vm6 = vcmp.lt.f32.partialorder %v249_v58, 0.5  ;;  %v409_v12 = vsub.f32 1.0, %v265_v63  ;;  %v282_v20 = vsub.f32 1.0, %v250_v8  ;;  %v270_v0 = vld [vmem:[%s1041_s30 + $0x58] sm:$0xff] }
  0x69   : > { %v439_v14 = vadd.f32 %v423_v5, %v391_v4  ;;  %v424_v15 = vmul.f32 %v408_v3, %v360_v6  ;;  %v297_v16 = vmul.f32 0.25, %v281_v7  ;;  %v345_v17 = vsel %vm329_vm6, 0.0, %v249_v58  ;;  %470 = vst [vmem:[#allocation2 + $0x18] sm:$0xff] %v454_v9 }
  0x6a   : > { %v392_v18 = vmul.f32 %v312_v11, %v264_v53  ;;  %v361_v19 = vmul.f32 %v345_v17, %v345_v17  ;;  %vm330_vm7 = vcmp.lt.f32.partialorder %v250_v8, 0.5  ;;  %v410_v27 = vsub.f32 1.0, %v266_v13  ;;  %v380_v11 = vld [vmem:[#allocation2 + $0x48] sm:$0xff] }
  0x6b   : > { %v455_v23 = vadd.f32 %v439_v14, %v375_v10  ;;  %v313_v25 = vmul.f32 %v297_v16, %v281_v7  ;;  %v346_v26 = vsel %vm330_vm7, 0.0, %v250_v8  ;;  %v298_v30 = vmul.f32 0.25, %v282_v20  ;;  %v255_v10 = vld [vmem:[%s1035_s17 + $0x60] sm:$0xff] }
  0x6c   : > { %v440_v28 = vadd.f32 %v424_v15, %v392_v18  ;;  %v425_v29 = vmul.f32 %v409_v12, %v361_v19  ;;  %v362_v31 = vmul.f32 %v346_v26, %v346_v26  ;;  %v283_v34 = vsub.f32 1.0, %v251_v21  ;;  %v271_v15 = vld [vmem:[%s1041_s30 + $0x60] sm:$0xff]  ;;  %v381_v18 = vld [vmem:[#allocation2 + $0x50] sm:$0xff] }
  0x6d   : > { %471 = vst [vmem:[#allocation2 + $0x20] sm:$0xff] %v455_v23  ;;  %v393_v33 = vmul.f32 %v313_v25, %v265_v63  ;;  %vm331_vm8 = vcmp.lt.f32.partialorder %v251_v21, 0.5  ;;  %v411_v35 = vsub.f32 1.0, %v267_v22  ;;  %v314_v40 = vmul.f32 %v298_v30, %v282_v20  ;;  %v272_v25 = vld [vmem:[%s1041_s30 + $0x68] sm:$0xff]  ;;  %v257_v30 = vld [vmem:[%s1035_s17 + $0x70] sm:$0xff] }
  0x6e   : > { %v456_v38 = vadd.f32 %v440_v28, %v376_v24  ;;  %v426_v41 = vmul.f32 %v410_v27, %v362_v31  ;;  %v347_v42 = vsel %vm331_vm8, 0.0, %v251_v21  ;;  %v299_v44 = vmul.f32 0.25, %v283_v34  ;;  %v256_v24 = vld [vmem:[%s1035_s17 + $0x68] sm:$0xff] }
  0x6f   : > { %v441_v43 = vadd.f32 %v425_v29, %v393_v33  ;;  %v363_v45 = vmul.f32 %v347_v42, %v347_v42  ;;  %v284_v46 = vsub.f32 1.0, %v252_v32  ;;  %v394_v47 = vmul.f32 %v314_v40, %v266_v13 }
  0x70   : > { %472 = vst [vmem:[#allocation2 + $0x28] sm:$0xff] %v456_v38  ;;  %vm332_vm9 = vcmp.lt.f32.partialorder %v252_v32, 0.5  ;;  %v412_v48 = vsub.f32 1.0, %v268_v36  ;;  %v285_v49 = vsub.f32 1.0, %v253_v37  ;;  %v315_v52 = vmul.f32 %v299_v44, %v283_v34  ;;  %v273_v38 = vld [vmem:[%s1041_s30 + $0x70] sm:$0xff] }
  0x71   : > { %v457_v50 = vadd.f32 %v441_v43, %v377_v39  ;;  %v427_v53 = vmul.f32 %v411_v35, %v363_v45  ;;  %v300_v54 = vmul.f32 0.25, %v284_v46  ;;  %v442_v56 = vadd.f32 %v426_v41, %v394_v47  ;;  %v382_v39 = vld [vmem:[#allocation2 + $0x58] sm:$0xff] }
  0x72   : > { %v348_v57 = vsel %vm332_vm9, 0.0, %v252_v32  ;;  %v301_v58 = vmul.f32 0.25, %v285_v49  ;;  %vm333_vm10 = vcmp.lt.f32.partialorder %v253_v37, 0.5  ;;  %v395_v60 = vmul.f32 %v315_v52, %v267_v22  ;;  %v258_v47 = vld [vmem:[%s1035_s17 + $0x78] sm:$0xff] }
  0x73   : > { %473 = vst [vmem:[#allocation2 + $0x30] sm:$0xff] %v457_v50  ;;  %v316_v61 = vmul.f32 %v300_v54, %v284_v46  ;;  %v364_v62 = vmul.f32 %v348_v57, %v348_v57  ;;  %v349_v63 = vsel %vm333_vm10, 0.0, %v253_v37  ;;  %v458_v1 = vadd.f32 %v442_v56, %v378_v51  ;;  %v274_v52 = vld [vmem:[%s1041_s30 + $0x78] sm:$0xff]  ;;  %v383_v54 = vld [vmem:[#allocation2 + $0x60] sm:$0xff] }
  0x74   : > { %v317_v3 = vmul.f32 %v301_v58, %v285_v49  ;;  %v365_v4 = vmul.f32 %v349_v63, %v349_v63  ;;  %v413_v5 = vsub.f32 1.0, %v269_v55  ;;  %v443_v6 = vadd.f32 %v427_v53, %v395_v60 }
  0x75   : > { %v396_v7 = vmul.f32 %v316_v61, %v268_v36  ;;  %v428_v8 = vmul.f32 %v412_v48, %v364_v62  ;;  %v286_v9 = vsub.f32 1.0, %v254_v59  ;;  %474 = vst [vmem:[#allocation2 + $0x38] sm:$0xff] %v458_v1  ;;  %vm334_vm11 = vcmp.lt.f32.partialorder %v254_v59, 0.5 }
  0x76   : > { %v397_v12 = vmul.f32 %v317_v3, %v269_v55  ;;  %v429_v13 = vmul.f32 %v413_v5, %v365_v4  ;;  %v414_v14 = vsub.f32 1.0, %v270_v0  ;;  %v459_v16 = vadd.f32 %v443_v6, %v379_v2  ;;  %v384_v2 = vld [vmem:[#allocation2 + $0x68] sm:$0xff] }
  0x77   : > { %v444_v17 = vadd.f32 %v428_v8, %v396_v7  ;;  %v302_v19 = vmul.f32 0.25, %v286_v9  ;;  %v350_v20 = vsel %vm334_vm11, 0.0, %v254_v59  ;;  %v287_v23 = vsub.f32 1.0, %v255_v10  ;;  %v385_v7 = vld [vmem:[#allocation2 + $0x70] sm:$0xff] }
  0x78   : > { %v445_v21 = vadd.f32 %v429_v13, %v397_v12  ;;  %v366_v22 = vmul.f32 %v350_v20, %v350_v20  ;;  %vm335_vm12 = vcmp.lt.f32.partialorder %v255_v10, 0.5  ;;  %475 = vst [vmem:[#allocation2 + $0x40] sm:$0xff] %v459_v16  ;;  %v415_v29 = vsub.f32 1.0, %v271_v15  ;;  %v490_v20 = vld [vmem:[#allocation2 + $0x18] sm:$0xff] (!%p632_p11) }
  0x79   : > { %v460_v26 = vadd.f32 %v444_v17, %v380_v11  ;;  %v318_v27 = vmul.f32 %v302_v19, %v286_v9  ;;  %v351_v28 = vsel %vm335_vm12, 0.0, %v255_v10  ;;  %v303_v33 = vmul.f32 0.25, %v287_v23  ;;  %v487_v17 = vld [vmem:[#allocation2] sm:$0xff] (!%p632_p11)  ;;  %v489_v19 = vld [vmem:[#allocation2 + $0x10] sm:$0xff] (!%p632_p11)  ;;  %506 = vst [vmem:[#allocation8 + $0x18] sm:$0xff] (!%p632_p11), %v490_v20 }
  0x7a   : > { %v461_v31 = vadd.f32 %v445_v21, %v381_v18  ;;  %v430_v32 = vmul.f32 %v414_v14, %v366_v22  ;;  %v367_v34 = vmul.f32 %v351_v28, %v351_v28  ;;  %v288_v36 = vsub.f32 1.0, %v256_v24  ;;  %v386_v14 = vld [vmem:[#allocation2 + $0x78] sm:$0xff]  ;;  %v488_v18 = vld [vmem:[#allocation2 + $0x8] sm:$0xff] (!%p632_p11)  ;;  %503 = vst [vmem:[#allocation8] sm:$0xff] (!%p632_p11), %v487_v17  ;;  %505 = vst [vmem:[#allocation8 + $0x10] sm:$0xff] (!%p632_p11), %v489_v19 }
  0x7b   : > { %476 = vst [vmem:[#allocation2 + $0x48] sm:$0xff] %v460_v26  ;;  %v398_v35 = vmul.f32 %v318_v27, %v270_v0  ;;  %vm336_vm13 = vcmp.lt.f32.partialorder %v256_v24, 0.5  ;;  %v416_v37 = vsub.f32 1.0, %v272_v25  ;;  %v319_v40 = vmul.f32 %v303_v33, %v287_v23  ;;  %504 = vst [vmem:[#allocation8 + $0x8] sm:$0xff] (!%p632_p11), %v488_v18  ;;  %v491_v21 = vld [vmem:[#allocation2 + $0x20] sm:$0xff] (!%p632_p11)  ;;  %v492_v22 = vld [vmem:[#allocation2 + $0x28] sm:$0xff] (!%p632_p11) }
  0x7c   : > { %477 = vst [vmem:[#allocation2 + $0x50] sm:$0xff] %v461_v31  ;;  %v431_v41 = vmul.f32 %v415_v29, %v367_v34  ;;  %v352_v42 = vsel %vm336_vm13, 0.0, %v256_v24  ;;  %v289_v43 = vsub.f32 1.0, %v257_v30  ;;  %v304_v45 = vmul.f32 0.25, %v288_v36  ;;  %507 = vst [vmem:[#allocation8 + $0x20] sm:$0xff] (!%p632_p11), %v491_v21  ;;  %v493_v23 = vld [vmem:[#allocation2 + $0x30] sm:$0xff] (!%p632_p11) }
  0x7d   : > { %v446_v44 = vadd.f32 %v430_v32, %v398_v35  ;;  %v368_v46 = vmul.f32 %v352_v42, %v352_v42  ;;  %vm337_vm14 = vcmp.lt.f32.partialorder %v257_v30, 0.5  ;;  %v399_v48 = vmul.f32 %v319_v40, %v271_v15  ;;  %508 = vst [vmem:[#allocation8 + $0x28] sm:$0xff] (!%p632_p11), %v492_v22  ;;  %v494_v24 = vld [vmem:[#allocation2 + $0x38] sm:$0xff] (!%p632_p11)  ;;  %509 = vst [vmem:[#allocation8 + $0x30] sm:$0xff] (!%p632_p11), %v493_v23 }
  0x7e   : > { %v305_v49 = vmul.f32 0.25, %v289_v43  ;;  %v353_v50 = vsel %vm337_vm14, 0.0, %v257_v30  ;;  %v417_v51 = vsub.f32 1.0, %v273_v38  ;;  %v320_v55 = vmul.f32 %v304_v45, %v288_v36  ;;  %510 = vst [vmem:[#allocation8 + $0x38] sm:$0xff] (!%p632_p11), %v494_v24 }
  0x7f   : > { %v462_v53 = vadd.f32 %v446_v44, %v382_v39  ;;  %v432_v56 = vmul.f32 %v416_v37, %v368_v46  ;;  %v369_v57 = vmul.f32 %v353_v50, %v353_v50  ;;  %v447_v58 = vadd.f32 %v431_v41, %v399_v48 }
  0x80   : > { %v321_v59 = vmul.f32 %v305_v49, %v289_v43  ;;  %v290_v60 = vsub.f32 1.0, %v258_v47  ;;  %vm338_vm15 = vcmp.lt.f32.partialorder %v258_v47, 0.5  ;;  %v400_v61 = vmul.f32 %v320_v55, %v272_v25  ;;  %v495_v25 = vld [vmem:[#allocation2 + $0x40] sm:$0xff] (!%p632_p11) }
  0x81   : > { %478 = vst [vmem:[#allocation2 + $0x58] sm:$0xff] %v462_v53  ;;  %v433_v62 = vmul.f32 %v417_v51, %v369_v57  ;;  %v354_v63 = vsel %vm338_vm15, 0.0, %v258_v47  ;;  %v418_v0 = vsub.f32 1.0, %v274_v52  ;;  %v463_v1 = vadd.f32 %v447_v58, %v383_v54  ;;  %511 = vst [vmem:[#allocation8 + $0x40] sm:$0xff] (!%p632_p11), %v495_v25 }
  0x82   : > { %v401_v3 = vmul.f32 %v321_v59, %v273_v38  ;;  %v306_v4 = vmul.f32 0.25, %v290_v60  ;;  %v370_v5 = vmul.f32 %v354_v63, %v354_v63  ;;  %v448_v6 = vadd.f32 %v432_v56, %v400_v61  ;;  %v496_v26 = vld [vmem:[#allocation2 + $0x48] sm:$0xff] (!%p632_p11) }
  0x83   : > { %479 = vst [vmem:[#allocation2 + $0x60] sm:$0xff] %v463_v1  ;;  %v497_v27 = vld [vmem:[#allocation2 + $0x50] sm:$0xff] (!%p632_p11)  ;;  %512 = vst [vmem:[#allocation8 + $0x48] sm:$0xff] (!%p632_p11), %v496_v26 }
  0x84   : > { %v449_v8 = vadd.f32 %v433_v62, %v401_v3  ;;  %v322_v9 = vmul.f32 %v306_v4, %v290_v60  ;;  %v434_v10 = vmul.f32 %v418_v0, %v370_v5  ;;  %v464_v11 = vadd.f32 %v448_v6, %v384_v2  ;;  %513 = vst [vmem:[#allocation8 + $0x50] sm:$0xff] (!%p632_p11), %v497_v27 }
  0x86   : > { %v465_v12 = vadd.f32 %v449_v8, %v385_v7  ;;  %v402_v13 = vmul.f32 %v322_v9, %v274_v52  ;;  %480 = vst [vmem:[#allocation2 + $0x68] sm:$0xff] %v464_v11  ;;  %486 = sbr.rel (%p632_p11) target bundleno = 149 (0x95), region = 44 }
  0x88   : > { %481 = vst [vmem:[#allocation2 + $0x70] sm:$0xff] %v465_v12  ;;  %v450_v15 = vadd.f32 %v434_v10, %v402_v13  ;;  %v498_v28 = vld [vmem:[#allocation2 + $0x58] sm:$0xff] (!%p632_p11) }
  0x89   : > { %514 = vst [vmem:[#allocation8 + $0x58] sm:$0xff] (!%p632_p11), %v498_v28 }
  0x8a   : > { %v466_v16 = vadd.f32 %v450_v15, %v386_v14  ;;  %v499_v29 = vld [vmem:[#allocation2 + $0x60] sm:$0xff] (!%p632_p11) }
  0x8b   : > { %515 = vst [vmem:[#allocation8 + $0x60] sm:$0xff] (!%p632_p11), %v499_v29 }
  0x8c   : > { %482 = vst [vmem:[#allocation2 + $0x78] sm:$0xff] %v466_v16 }
  0x8d   : > { %v500_v30 = vld [vmem:[#allocation2 + $0x68] sm:$0xff] }
  0x8e   : > { %516 = vst [vmem:[#allocation8 + $0x68] sm:$0xff] %v500_v30 }
  0x8f   : > { %v501_v31 = vld [vmem:[#allocation2 + $0x70] sm:$0xff] }
  0x90   : > { %517 = vst [vmem:[#allocation8 + $0x70] sm:$0xff] %v501_v31 }
  0x93   : > { %v502_v32 = vld [vmem:[#allocation2 + $0x78] sm:$0xff] }
  0x94   : > { %518 = vst [vmem:[#allocation8 + $0x78] sm:$0xff] %v502_v32 }
  0x95 PF: > { %p1083_p4 = scmp.eq.s32.totalorder %s619_s15, 3  ;;  %s862_s20 = smov [#allocation8]  }
  0x96   : > { %s528_s26 = sshll.u32 %s862_s20, 4  ;;  %s529_s26 = int_to_ptr.vmem [resolvable:$true] %s528_s26 }
  0x97   : > { %s771_s28 = scalar_lea.vmem %s529_s26, 2048  ;;  %p778_p13 = scmp.lt.s32.totalorder %s529_s26, %s529_s26 }
  0x98   : > { %p772_p8 = scmp.ne.s32.totalorder %s529_s26, %s771_s28  ;;  %p779_p3 = scmp.lt.s32.totalorder %s771_s28, %s771_s28 }
  0x9a   : > { %p773_p1 = pnand %p772_p8, %p1083_p4  ;;  %p780_p5 = por %p779_p3, %p778_p13 }
  0x9c   : > { %p774_p2 = pneg %p773_p1 }
  0x9e   : > { %p781_p6 = pnand %p780_p5, %p774_p2 }
  0xa0   : > { %784 = shalt.err (!%p781_p6)
}
  0xa1   : > { %s785_s15 = scalar_lea.hbm %s1129_s2, 2048 }
  0xa2   : > { %p786_p10 = scmp.ne.s32.totalorder %s1129_s2, %s785_s15  ;;  %p791_p7 = scmp.lt.u32.totalorder %s785_s15, %s1129_s2 }
  0xa4   : > { %p787_p12 = pnand %p786_p10, %p1083_p4 }
  0xa6   : > { %p788_p0 = pneg %p787_p12 }
  0xa8   : > { %p793_p9 = pnand %p791_p7, %p788_p0 }
  0xaa   : > { %796 = shalt.err (!%p793_p9)
}
  0xab   : > { %s863_s19 = smov 512   ;;  %s864_s24 = smov 32  }
  0xac   : > { %644 = dma.vmem_to_hbm [thread:$0]  (%p1083_p4), %s529_s26, 2048, %s1129_s2, [#allocation5], %s863_s19, %s863_s19, %s864_s24  }
  0xad   : > { %830 = dma.done.wait (%p1083_p4), [#allocation5], 2048  }
  0xae   : > { %832 = vsyncadd (%p1083_p4), [#allocation5], 4294965248 }
  0xaf PF: > { %s19_s14 = sadd.s32 1, %s855_s14   ;;  %s1137_s9 = smov %s839_s10 }
  0xb0   : > { %p16_p11 = scmp.ge.s32.totalorder %s19_s14, 6   ;;  %s1138_s10 = smov %s843_s11 }
  0xb1   : > { %s1139_s11 = smov %s931_s21  ;;  %s1140_s12 = smov %s851_s13 }
  0xb2   : > { %s1141_s13 = smov %s1143_s16  ;;  %18 = sbr.rel (!%p16_p11) target bundleno = 7 (0x7), region = 87 }
  0xb9   :  { %544 = vsyncpa [#allocation4], 1 }
  0xba   :  { %546 = vsyncpa [#allocation4 + $0x1], 1 }
  0xbb   :  { %547 = vsyncpa [#allocation7], 1 }
  0xbc   :  { %549 = vsyncpa [#allocation7 + $0x1], 1 }
  0xbd   :  { %550 = vsyncpa [#allocation5], 1 }
  0xbe   :  { %552 = vsyncpa [#allocation5 + $0x1], 1 }

</bundles_post_ra>
